<compile_context>
chip_gen: v7x
topology: tpu7x:2x2x1
jax: 0.10.0
libtpu: 0.0.40
codegen_flags: <defaults>
</compile_context>

<pallas_src>
import math

import jax
import jax.numpy as jnp
from jax.experimental import pallas as pl
from jax.experimental.pallas import tpu as pltpu

_INV_SQRT2 = 0.7071067811865476


def _gelu_exact(x):
    # PyTorch nn.GELU() / F.gelu default: exact erf-based GELU.
    return 0.5 * x * (1.0 + jax.lax.erf(x * _INV_SQRT2))


def _gelu_tanh(x):
    # tanh-approximate GELU: transcendental goes to the EUP slot.
    return jax.nn.gelu(x, approximate=True)


def _round_up(x, m):
    return ((x + m - 1) // m) * m


def _build_kernel(res_ops, num_res_layers, cast_dim, n_chunks, chunk_b, unroll,
                  approx_gelu):
    """Fused forward kernel for one (8, tile_b) feature tile (feature-major)."""
    gelu = _gelu_tanh if approx_gelu else _gelu_exact

    def kernel(feat_ref, w1_ref, *rest):
        out_ref = rest[-1]
        res_refs = rest[:-1]

        # Weights loaded once per grid step (resident whole-array blocks).
        w1 = w1_ref[...]                           # (cast_dim + 4, 8); bias in col 5
        res_params = []
        for i in range(num_res_layers):
            w = res_refs[2 * i][...]               # (out, in)
            b = res_refs[2 * i + 1][...]           # (out, 1)
            # Hoisted lane-broadcast of the bias: broadcast_in_dim is not CSE'd,
            # so doing it inside the chunk loop would re-execute every chunk.
            res_params.append((w, jnp.broadcast_to(b, (w.shape[0], chunk_b))))

        def chunk_body(ci, carry):
            c0 = pl.multiple_of(ci * chunk_b, chunk_b)
            x = feat_ref[:, pl.ds(c0, chunk_b)]                  # (8, C) lane-dense

            # Fused first stage: z = [in_linear | bypass] @ x  (+ bias via the
            # ones feature row folded into column 5 of w1).
            z = jnp.dot(w1, x, preferred_element_type=jnp.float32)   # (cast+4, C)
            h = gelu(z[:cast_dim, :])                            # in_linear path
            bypass = z[cast_dim:, :]                             # (4, C)

            li = 0
            for op in res_ops:
                if op == "gelu":
                    h = gelu(h)
                else:  # "rl"  (note: the module really does apply GELU twice
                    #  back-to-back for num_ripple_layers >= 2 -- mirrored here)
                    w, b_b = res_params[li]
                    h = jnp.dot(w, h, preferred_element_type=jnp.float32) + b_b
                    li += 1

            # Unmasked lane-dense store (batch on the 128-lane axis).
            out_ref[:, pl.ds(c0, chunk_b)] = jax.nn.sigmoid(h + bypass)
            return carry

        jax.lax.fori_loop(0, n_chunks, chunk_body, 0, unroll=unroll)

    return kernel


def _linear_params(key, in_dim, out_dim):
    """Deterministic PyTorch-Linear-style init; weight stored as (in, out)."""
    kw, kb = jax.random.split(key)
    bound = 1.0 / math.sqrt(in_dim)
    w = jax.random.uniform(kw, (in_dim, out_dim), jnp.float32, -bound, bound)
    b = jax.random.uniform(kb, (1, out_dim), jnp.float32, -bound, bound)
    return w, b


def init_ripple_nerf_params(key, hidden_dim, cast_dim, num_ripple_layers):
    if num_ripple_layers < 1:
        raise ValueError(
            f"The number of inner ripple layers must be at least 1, got {num_ripple_layers}"
        )

    # Mirror the PyTorch constructor to get res_block op order + layer shapes.
    if num_ripple_layers == 1:
        res_ops = ["rl"]
        res_shapes = [(cast_dim, 4)]
    else:
        res_ops = ["rl", "gelu"]
        res_shapes = [(cast_dim, hidden_dim)]
        for layer_idx in range(num_ripple_layers - 1):
            out_dim = hidden_dim if layer_idx < num_ripple_layers - 2 else 4
            res_ops += ["gelu", "rl"]
            res_shapes.append((hidden_dim, out_dim))

    keys = jax.random.split(key, 2 + len(res_shapes))
    in_w, in_b = _linear_params(keys[0], 5, cast_dim)
    byp_w, byp_b = _linear_params(keys[1], 5, 4)
    res_layers = [
        _linear_params(keys[2 + i], di, do) for i, (di, do) in enumerate(res_shapes)
    ]

    return {
        "in_w": in_w,
        "in_b": in_b,
        "bypass_w": byp_w,
        "bypass_b": byp_b,
        "res_layers": res_layers,
        "res_ops": res_ops,
    }


def ripple_nerf_forward(params, origin, direction, coordinate_multiplier,
                        *, tile_b=32768, chunk_b=512, approx_gelu=True,
                        core_parallel=False):
    """Forward pass.  origin, direction: (B, 3) float32.

    Returns {'color': (B, 3), 'sigma': (B,)}.
    """
    assert chunk_b % 128 == 0, "chunk_b must be a multiple of the 128-lane width"
    assert tile_b % chunk_b == 0
    origin = origin.astype(jnp.float32)
    direction = direction.astype(jnp.float32)
    batch = origin.shape[0]
    cm = jnp.float32(coordinate_multiplier)

    # Feature prep fused with the lane-dense repack: one (8, B) slab is the only
    # HBM intermediate.  Row 5 is a ones row (folds the first-layer bias into
    # the fused weight); rows 6-7 pad to a full 8-sublane tile.  The two atan2
    # calls stay in this fused XLA elementwise pass.
    d0, d1, d2 = direction[:, 0], direction[:, 1], direction[:, 2]
    yaw = jnp.arctan2(d0, d1) * cm
    pitch = jnp.arctan2(d2, jnp.sqrt(d0 * d0 + d1 * d1)) * cm
    feat = jnp.stack([
        origin[:, 0] * cm, origin[:, 1] * cm, origin[:, 2] * cm,
        yaw, pitch,
        jnp.ones((batch,), jnp.float32),
        jnp.zeros((batch,), jnp.float32),
        jnp.zeros((batch,), jnp.float32),
    ], axis=0)                                                   # (8, B)

    # Batch tiling: shrink the tile for small batches, pad ragged batches.
    tile_b = max(chunk_b, min(tile_b, _round_up(batch, chunk_b)))
    b_pad = _round_up(batch, tile_b)
    if b_pad != batch:
        feat = jnp.pad(feat, ((0, 0), (0, b_pad - batch)))

    cast_dim = params["in_w"].shape[1]
    # Fused, transposed first-stage weight (cast_dim+4, 8):
    #   rows    = [in_linear outputs | bypass outputs]
    #   cols 0..4 = the 5 input features, col 5 = bias, cols 6..7 = zero pad.
    w_in_t = jnp.concatenate(
        [params["in_w"].T, params["in_b"].T, jnp.zeros((cast_dim, 2), jnp.float32)],
        axis=1)
    w_by_t = jnp.concatenate(
        [params["bypass_w"].T, params["bypass_b"].T, jnp.zeros((4, 2), jnp.float32)],
        axis=1)
    w1 = jnp.concatenate([w_in_t, w_by_t], axis=0)               # (cast_dim+4, 8)

    flat = [feat, w1]
    for w, b in params["res_layers"]:
        flat += [w.T, b.T]            # feature-major: (out, in) weight, (out, 1) bias

    n_tiles = b_pad // tile_b
    n_chunks = tile_b // chunk_b
    unroll = n_chunks if n_chunks <= 8 else 8

    kernel = _build_kernel(params["res_ops"], len(params["res_layers"]),
                           cast_dim, n_chunks, chunk_b, unroll, approx_gelu)

    def _resident(arr):
        # Whole-array block + constant index map: fetched once, stays in VMEM.
        return pl.BlockSpec(arr.shape, lambda i: (0,) * arr.ndim)

    in_specs = [pl.BlockSpec((8, tile_b), lambda i: (0, i))] \
             + [_resident(a) for a in flat[1:]]

    # On v7x, core_parallel=True shards the batch grid across both TensorCores.
    dim_sem = (pltpu.CORE_PARALLEL,) if core_parallel else ("parallel",)

    out = pl.pallas_call(
        kernel,
        out_shape=jax.ShapeDtypeStruct((4, b_pad), jnp.float32),
        grid=(n_tiles,),
        in_specs=in_specs,
        out_specs=pl.BlockSpec((4, tile_b), lambda i: (0, i)),
        compiler_params=pltpu.CompilerParams(
            dimension_semantics=dim_sem,
            vmem_limit_bytes=32 * 1024 * 1024),
    )(*flat)

    out = out[:, :batch]
    return {"color": out[:3, :].T, "sigma": out[3, :]}


def _reference_forward(params, origin, direction, coordinate_multiplier,
                       *, approx_gelu=True):
    """Pure-JAX reference mirroring the PyTorch forward (RippleLinear as affine)."""
    gelu = _gelu_tanh if approx_gelu else _gelu_exact
    origin = origin * coordinate_multiplier
    d0, d1, d2 = direction[:, 0], direction[:, 1], direction[:, 2]
    yaw = (jnp.arctan2(d0, d1) * coordinate_multiplier)[:, None]
    pitch = (jnp.arctan2(d2, jnp.sqrt(d0 ** 2 + d1 ** 2)) * coordinate_multiplier)[:, None]
    x = jnp.concatenate([origin, yaw, pitch], axis=1)
    bypass = x @ params["bypass_w"] + params["bypass_b"]
    h = gelu(x @ params["in_w"] + params["in_b"])
    li = 0
    for op in params["res_ops"]:
        if op == "gelu":
            h = gelu(h)
        else:
            w, b = params["res_layers"][li]
            h = h @ w + b
            li += 1
    y = jax.nn.sigmoid(h + bypass)
    return {"color": y[:, :3], "sigma": y[:, 3]}


if __name__ == "__main__":
    hidden_dim = 32
    cast_dim = 32
    num_ripple_layers = 2
    coordinate_multiplier = 1.5
    batch = 300   # deliberately ragged: exercises padding + a 2-tile, 2-chunk grid

    key = jax.random.PRNGKey(0)
    kp, ko, kd = jax.random.split(key, 3)
    params = init_ripple_nerf_params(kp, hidden_dim, cast_dim, num_ripple_layers)

    origin = jax.random.normal(ko, (batch, 3), jnp.float32)
    direction = jax.random.normal(kd, (batch, 3), jnp.float32)

    # Deployed path: approximate (tanh / EUP-routed) GELU.
    out = ripple_nerf_forward(params, origin, direction, coordinate_multiplier,
                              tile_b=256, chunk_b=128)
    jax.block_until_ready(out)
    assert out["color"].shape == (batch, 3)
    assert out["sigma"].shape == (batch,)
    assert bool(jnp.all(jnp.isfinite(out["color"])))
    assert bool(jnp.all(jnp.isfinite(out["sigma"])))
    ref = _reference_forward(params, origin, direction, coordinate_multiplier,
                             approx_gelu=True)
    assert bool(jnp.allclose(out["color"], ref["color"], atol=1e-3, rtol=1e-3))
    assert bool(jnp.allclose(out["sigma"], ref["sigma"], atol=1e-3, rtol=1e-3))

    # Faithful path: exact erf GELU (matches PyTorch F.gelu default).
    out_exact = ripple_nerf_forward(params, origin, direction,
                                    coordinate_multiplier,
                                    tile_b=256, chunk_b=128, approx_gelu=False)
    jax.block_until_ready(out_exact)
    ref_exact = _reference_forward(params, origin, direction,
                                   coordinate_multiplier, approx_gelu=False)
    assert bool(jnp.allclose(out_exact["color"], ref_exact["color"], atol=1e-3, rtol=1e-3))
    assert bool(jnp.allclose(out_exact["sigma"], ref_exact["sigma"], atol=1e-3, rtol=1e-3))

    print("KERNEL_OK")
</pallas_src>

<mosaic_0001>
module attributes {stable_mosaic.version = 11 : i64} {
  func.func @kernel(%arg0: i32, %arg1: memref<8x256xf32, #tpu.memory_space<vmem>>, %arg2: memref<36x8xf32, #tpu.memory_space<vmem>>, %arg3: memref<32x32xf32, #tpu.memory_space<vmem>>, %arg4: memref<32x1xf32, #tpu.memory_space<vmem>>, %arg5: memref<4x32xf32, #tpu.memory_space<vmem>>, %arg6: memref<4x1xf32, #tpu.memory_space<vmem>>, %arg7: memref<4x256xf32, #tpu.memory_space<vmem>>) attributes {dimension_semantics = [#tpu.dimension_semantics<parallel>], iteration_bounds = array<i64: 2>, scalar_prefetch = 0 : i64, scratch_operands = 0 : i64, tpu.core_type = #tpu.core_type<tc>, window_params = [{transform_indices = @transform_0, window_bounds = array<i64: 8, 256>}, {pipeline_mode = #tpu.pipeline_mode<synchronous>, transform_indices = @transform_1, window_bounds = array<i64: 36, 8>}, {pipeline_mode = #tpu.pipeline_mode<synchronous>, transform_indices = @transform_2, window_bounds = array<i64: 32, 32>}, {pipeline_mode = #tpu.pipeline_mode<synchronous>, transform_indices = @transform_3, window_bounds = array<i64: 32, 1>}, {pipeline_mode = #tpu.pipeline_mode<synchronous>, transform_indices = @transform_4, window_bounds = array<i64: 4, 32>}, {pipeline_mode = #tpu.pipeline_mode<synchronous>, transform_indices = @transform_5, window_bounds = array<i64: 4, 1>}, {transform_indices = @transform_6, window_bounds = array<i64: 4, 256>}]} {
    %c0 = arith.constant 0 : index
    %c0_0 = arith.constant 0 : index
    %0 = vector.load %arg2[%c0, %c0_0] : memref<36x8xf32, #tpu.memory_space<vmem>>, vector<36x8xf32>
    %c0_1 = arith.constant 0 : index
    %c0_2 = arith.constant 0 : index
    %1 = vector.load %arg3[%c0_1, %c0_2] : memref<32x32xf32, #tpu.memory_space<vmem>>, vector<32x32xf32>
    %c0_3 = arith.constant 0 : index
    %c0_4 = arith.constant 0 : index
    %2 = vector.load %arg4[%c0_3, %c0_4] : memref<32x1xf32, #tpu.memory_space<vmem>>, vector<32x1xf32>
    %3 = vector.shape_cast %2 : vector<32x1xf32> to vector<32x1xf32>
    %4 = vector.broadcast %3 : vector<32x1xf32> to vector<32x128xf32>
    %c0_5 = arith.constant 0 : index
    %c0_6 = arith.constant 0 : index
    %5 = vector.load %arg5[%c0_5, %c0_6] : memref<4x32xf32, #tpu.memory_space<vmem>>, vector<4x32xf32>
    %c0_7 = arith.constant 0 : index
    %c0_8 = arith.constant 0 : index
    %6 = vector.load %arg6[%c0_7, %c0_8] : memref<4x1xf32, #tpu.memory_space<vmem>>, vector<4x1xf32>
    %7 = vector.shape_cast %6 : vector<4x1xf32> to vector<4x1xf32>
    %8 = vector.broadcast %7 : vector<4x1xf32> to vector<4x128xf32>
    %c0_i32 = arith.constant 0 : i32
    %c128_i32 = arith.constant 128 : i32
    %9 = arith.muli %c0_i32, %c128_i32 : i32
    %10 = tpu.assume_multiple %9, 128 : i32
    %c0_9 = arith.constant 0 : index
    %11 = arith.index_cast %10 : i32 to index
    %12 = vector.load %arg1[%c0_9, %11] : memref<8x256xf32, #tpu.memory_space<vmem>>, vector<8x128xf32>
    %cst = arith.constant dense<0.000000e+00> : vector<36x128xf32>
    %13 = tpu.matmul %0, %12, %cst {dimension_numbers = #tpu.dot_dimension_numbers<[1], [0], [0], [1], [0, 0, 1, 1], [], []>} : vector<36x8xf32>, vector<8x128xf32>, vector<36x128xf32> -> vector<36x128xf32>
    %14 = vector.extract_strided_slice %13 {offsets = [0, 0], sizes = [32, 128], strides = [1, 1]} : vector<36x128xf32> to vector<32x128xf32>
    %15 = arith.mulf %14, %14 : vector<32x128xf32>
    %16 = arith.mulf %14, %15 : vector<32x128xf32>
    %cst_10 = arith.constant 4.471500e-02 : f32
    %17 = vector.broadcast %cst_10 : f32 to vector<32x128xf32>
    %18 = arith.mulf %17, %16 : vector<32x128xf32>
    %19 = arith.addf %14, %18 : vector<32x128xf32>
    %cst_11 = arith.constant 0.797884583 : f32
    %20 = vector.broadcast %cst_11 : f32 to vector<32x128xf32>
    %21 = arith.mulf %20, %19 : vector<32x128xf32>
    %22 = math.tanh %21 : vector<32x128xf32>
    %cst_12 = arith.constant 1.000000e+00 : f32
    %23 = vector.broadcast %cst_12 : f32 to vector<32x128xf32>
    %24 = arith.addf %23, %22 : vector<32x128xf32>
    %cst_13 = arith.constant 5.000000e-01 : f32
    %25 = vector.broadcast %cst_13 : f32 to vector<32x128xf32>
    %26 = arith.mulf %25, %24 : vector<32x128xf32>
    %27 = arith.mulf %14, %26 : vector<32x128xf32>
    %28 = vector.extract_strided_slice %13 {offsets = [32, 0], sizes = [4, 128], strides = [1, 1]} : vector<36x128xf32> to vector<4x128xf32>
    %cst_14 = arith.constant dense<0.000000e+00> : vector<32x128xf32>
    %29 = tpu.matmul %1, %27, %cst_14 {dimension_numbers = #tpu.dot_dimension_numbers<[1], [0], [0], [1], [0, 0, 1, 1], [], []>} : vector<32x32xf32>, vector<32x128xf32>, vector<32x128xf32> -> vector<32x128xf32>
    %30 = arith.addf %29, %4 : vector<32x128xf32>
    %31 = arith.mulf %30, %30 : vector<32x128xf32>
    %32 = arith.mulf %30, %31 : vector<32x128xf32>
    %cst_15 = arith.constant 4.471500e-02 : f32
    %33 = vector.broadcast %cst_15 : f32 to vector<32x128xf32>
    %34 = arith.mulf %33, %32 : vector<32x128xf32>
    %35 = arith.addf %30, %34 : vector<32x128xf32>
    %cst_16 = arith.constant 0.797884583 : f32
    %36 = vector.broadcast %cst_16 : f32 to vector<32x128xf32>
    %37 = arith.mulf %36, %35 : vector<32x128xf32>
    %38 = math.tanh %37 : vector<32x128xf32>
    %cst_17 = arith.constant 1.000000e+00 : f32
    %39 = vector.broadcast %cst_17 : f32 to vector<32x128xf32>
    %40 = arith.addf %39, %38 : vector<32x128xf32>
    %cst_18 = arith.constant 5.000000e-01 : f32
    %41 = vector.broadcast %cst_18 : f32 to vector<32x128xf32>
    %42 = arith.mulf %41, %40 : vector<32x128xf32>
    %43 = arith.mulf %30, %42 : vector<32x128xf32>
    %44 = arith.mulf %43, %43 : vector<32x128xf32>
    %45 = arith.mulf %43, %44 : vector<32x128xf32>
    %cst_19 = arith.constant 4.471500e-02 : f32
    %46 = vector.broadcast %cst_19 : f32 to vector<32x128xf32>
    %47 = arith.mulf %46, %45 : vector<32x128xf32>
    %48 = arith.addf %43, %47 : vector<32x128xf32>
    %cst_20 = arith.constant 0.797884583 : f32
    %49 = vector.broadcast %cst_20 : f32 to vector<32x128xf32>
    %50 = arith.mulf %49, %48 : vector<32x128xf32>
    %51 = math.tanh %50 : vector<32x128xf32>
    %cst_21 = arith.constant 1.000000e+00 : f32
    %52 = vector.broadcast %cst_21 : f32 to vector<32x128xf32>
    %53 = arith.addf %52, %51 : vector<32x128xf32>
    %cst_22 = arith.constant 5.000000e-01 : f32
    %54 = vector.broadcast %cst_22 : f32 to vector<32x128xf32>
    %55 = arith.mulf %54, %53 : vector<32x128xf32>
    %56 = arith.mulf %43, %55 : vector<32x128xf32>
    %cst_23 = arith.constant dense<0.000000e+00> : vector<4x128xf32>
    %57 = tpu.matmul %5, %56, %cst_23 {dimension_numbers = #tpu.dot_dimension_numbers<[1], [0], [0], [1], [0, 0, 1, 1], [], []>} : vector<4x32xf32>, vector<32x128xf32>, vector<4x128xf32> -> vector<4x128xf32>
    %58 = arith.addf %57, %8 : vector<4x128xf32>
    %59 = arith.addf %58, %28 : vector<4x128xf32>
    %60 = arith.negf %59 : vector<4x128xf32>
    %61 = math.exp %60 : vector<4x128xf32>
    %cst_24 = arith.constant 1.000000e+00 : f32
    %62 = vector.broadcast %cst_24 : f32 to vector<4x128xf32>
    %63 = arith.addf %62, %61 : vector<4x128xf32>
    %64 = arith.divf %62, %63 : vector<4x128xf32>
    %c0_25 = arith.constant 0 : index
    %65 = arith.index_cast %10 : i32 to index
    %66 = vector.load %arg7[%c0_25, %65] : memref<4x256xf32, #tpu.memory_space<vmem>>, vector<4x128xf32>
    tpu.vector_store %arg7[%c0_25, %65], %64 {strides = array<i32>} : memref<4x256xf32, #tpu.memory_space<vmem>>, vector<4x128xf32>,
    %c1_i32 = arith.constant 1 : i32
    %c128_i32_26 = arith.constant 128 : i32
    %67 = arith.muli %c1_i32, %c128_i32_26 : i32
    %68 = tpu.assume_multiple %67, 128 : i32
    %c0_27 = arith.constant 0 : index
    %69 = arith.index_cast %68 : i32 to index
    %70 = vector.load %arg1[%c0_27, %69] : memref<8x256xf32, #tpu.memory_space<vmem>>, vector<8x128xf32>
    %cst_28 = arith.constant dense<0.000000e+00> : vector<36x128xf32>
    %71 = tpu.matmul %0, %70, %cst_28 {dimension_numbers = #tpu.dot_dimension_numbers<[1], [0], [0], [1], [0, 0, 1, 1], [], []>} : vector<36x8xf32>, vector<8x128xf32>, vector<36x128xf32> -> vector<36x128xf32>
    %72 = vector.extract_strided_slice %71 {offsets = [0, 0], sizes = [32, 128], strides = [1, 1]} : vector<36x128xf32> to vector<32x128xf32>
    %73 = arith.mulf %72, %72 : vector<32x128xf32>
    %74 = arith.mulf %72, %73 : vector<32x128xf32>
    %cst_29 = arith.constant 4.471500e-02 : f32
    %75 = vector.broadcast %cst_29 : f32 to vector<32x128xf32>
    %76 = arith.mulf %75, %74 : vector<32x128xf32>
    %77 = arith.addf %72, %76 : vector<32x128xf32>
    %cst_30 = arith.constant 0.797884583 : f32
    %78 = vector.broadcast %cst_30 : f32 to vector<32x128xf32>
    %79 = arith.mulf %78, %77 : vector<32x128xf32>
    %80 = math.tanh %79 : vector<32x128xf32>
    %cst_31 = arith.constant 1.000000e+00 : f32
    %81 = vector.broadcast %cst_31 : f32 to vector<32x128xf32>
    %82 = arith.addf %81, %80 : vector<32x128xf32>
    %cst_32 = arith.constant 5.000000e-01 : f32
    %83 = vector.broadcast %cst_32 : f32 to vector<32x128xf32>
    %84 = arith.mulf %83, %82 : vector<32x128xf32>
    %85 = arith.mulf %72, %84 : vector<32x128xf32>
    %86 = vector.extract_strided_slice %71 {offsets = [32, 0], sizes = [4, 128], strides = [1, 1]} : vector<36x128xf32> to vector<4x128xf32>
    %cst_33 = arith.constant dense<0.000000e+00> : vector<32x128xf32>
    %87 = tpu.matmul %1, %85, %cst_33 {dimension_numbers = #tpu.dot_dimension_numbers<[1], [0], [0], [1], [0, 0, 1, 1], [], []>} : vector<32x32xf32>, vector<32x128xf32>, vector<32x128xf32> -> vector<32x128xf32>
    %88 = arith.addf %87, %4 : vector<32x128xf32>
    %89 = arith.mulf %88, %88 : vector<32x128xf32>
    %90 = arith.mulf %88, %89 : vector<32x128xf32>
    %cst_34 = arith.constant 4.471500e-02 : f32
    %91 = vector.broadcast %cst_34 : f32 to vector<32x128xf32>
    %92 = arith.mulf %91, %90 : vector<32x128xf32>
    %93 = arith.addf %88, %92 : vector<32x128xf32>
    %cst_35 = arith.constant 0.797884583 : f32
    %94 = vector.broadcast %cst_35 : f32 to vector<32x128xf32>
    %95 = arith.mulf %94, %93 : vector<32x128xf32>
    %96 = math.tanh %95 : vector<32x128xf32>
    %cst_36 = arith.constant 1.000000e+00 : f32
    %97 = vector.broadcast %cst_36 : f32 to vector<32x128xf32>
    %98 = arith.addf %97, %96 : vector<32x128xf32>
    %cst_37 = arith.constant 5.000000e-01 : f32
    %99 = vector.broadcast %cst_37 : f32 to vector<32x128xf32>
    %100 = arith.mulf %99, %98 : vector<32x128xf32>
    %101 = arith.mulf %88, %100 : vector<32x128xf32>
    %102 = arith.mulf %101, %101 : vector<32x128xf32>
    %103 = arith.mulf %101, %102 : vector<32x128xf32>
    %cst_38 = arith.constant 4.471500e-02 : f32
    %104 = vector.broadcast %cst_38 : f32 to vector<32x128xf32>
    %105 = arith.mulf %104, %103 : vector<32x128xf32>
    %106 = arith.addf %101, %105 : vector<32x128xf32>
    %cst_39 = arith.constant 0.797884583 : f32
    %107 = vector.broadcast %cst_39 : f32 to vector<32x128xf32>
    %108 = arith.mulf %107, %106 : vector<32x128xf32>
    %109 = math.tanh %108 : vector<32x128xf32>
    %cst_40 = arith.constant 1.000000e+00 : f32
    %110 = vector.broadcast %cst_40 : f32 to vector<32x128xf32>
    %111 = arith.addf %110, %109 : vector<32x128xf32>
    %cst_41 = arith.constant 5.000000e-01 : f32
    %112 = vector.broadcast %cst_41 : f32 to vector<32x128xf32>
    %113 = arith.mulf %112, %111 : vector<32x128xf32>
    %114 = arith.mulf %101, %113 : vector<32x128xf32>
    %cst_42 = arith.constant dense<0.000000e+00> : vector<4x128xf32>
    %115 = tpu.matmul %5, %114, %cst_42 {dimension_numbers = #tpu.dot_dimension_numbers<[1], [0], [0], [1], [0, 0, 1, 1], [], []>} : vector<4x32xf32>, vector<32x128xf32>, vector<4x128xf32> -> vector<4x128xf32>
    %116 = arith.addf %115, %8 : vector<4x128xf32>
    %117 = arith.addf %116, %86 : vector<4x128xf32>
    %118 = arith.negf %117 : vector<4x128xf32>
    %119 = math.exp %118 : vector<4x128xf32>
    %cst_43 = arith.constant 1.000000e+00 : f32
    %120 = vector.broadcast %cst_43 : f32 to vector<4x128xf32>
    %121 = arith.addf %120, %119 : vector<4x128xf32>
    %122 = arith.divf %120, %121 : vector<4x128xf32>
    %c0_44 = arith.constant 0 : index
    %123 = arith.index_cast %68 : i32 to index
    %124 = vector.load %arg7[%c0_44, %123] : memref<4x256xf32, #tpu.memory_space<vmem>>, vector<4x128xf32>
    tpu.vector_store %arg7[%c0_44, %123], %122 {strides = array<i32>} : memref<4x256xf32, #tpu.memory_space<vmem>>, vector<4x128xf32>,
    %c2_i32 = arith.constant 2 : i32
    return
  }
  func.func @transform_0(%arg0: i32) -> (i32, i32) {
    %c0_i32 = arith.constant 0 : i32
    %c0_i32_0 = arith.constant 0 : i32
    return %c0_i32, %arg0 : i32, i32
  }
  func.func @transform_1(%arg0: i32) -> (i32, i32) {
    %c0_i32 = arith.constant 0 : i32
    %c0_i32_0 = arith.constant 0 : i32
    %c0_i32_1 = arith.constant 0 : i32
    return %c0_i32, %c0_i32_0 : i32, i32
  }
  func.func @transform_2(%arg0: i32) -> (i32, i32) {
    %c0_i32 = arith.constant 0 : i32
    %c0_i32_0 = arith.constant 0 : i32
    %c0_i32_1 = arith.constant 0 : i32
    return %c0_i32, %c0_i32_0 : i32, i32
  }
  func.func @transform_3(%arg0: i32) -> (i32, i32) {
    %c0_i32 = arith.constant 0 : i32
    %c0_i32_0 = arith.constant 0 : i32
    %c0_i32_1 = arith.constant 0 : i32
    return %c0_i32, %c0_i32_0 : i32, i32
  }
  func.func @transform_4(%arg0: i32) -> (i32, i32) {
    %c0_i32 = arith.constant 0 : i32
    %c0_i32_0 = arith.constant 0 : i32
    %c0_i32_1 = arith.constant 0 : i32
    return %c0_i32, %c0_i32_0 : i32, i32
  }
  func.func @transform_5(%arg0: i32) -> (i32, i32) {
    %c0_i32 = arith.constant 0 : i32
    %c0_i32_0 = arith.constant 0 : i32
    %c0_i32_1 = arith.constant 0 : i32
    return %c0_i32, %c0_i32_0 : i32, i32
  }
  func.func @transform_6(%arg0: i32) -> (i32, i32) {
    %c0_i32 = arith.constant 0 : i32
    %c0_i32_0 = arith.constant 0 : i32
    return %c0_i32, %arg0 : i32, i32
  }
}

</mosaic_0001>

<bundles_post_ra>
// kernel: tpu_custom_call.1
= control target key start
LH: loop header
LB: loop body
LE: loop exit
PB: predicated region body
PF: predicated region fallthrough
CT: control target
= control target key end

     0   :  { %11 = vsyncpa [#allocation3], 0  ;;  %s1842_s0 = inlined_call_operand.vmem [shape: f32[8,512], index: 0, kind: input, shape index: {}]   ;;  %s1843_s1 = inlined_call_operand.vmem [shape: f32[36,8], index: 1, kind: input, shape index: {}]   ;;  %s1844_s2 = inlined_call_operand.vmem [shape: f32[32,32], index: 2, kind: input, shape index: {}]   ;;  %s1845_s3 = inlined_call_operand.vmem [shape: f32[32,1], index: 3, kind: input, shape index: {}]   ;;  %s1846_s4 = inlined_call_operand.vmem [shape: f32[4,32], index: 4, kind: input, shape index: {}]   ;;  %s1847_s5 = inlined_call_operand.vmem [shape: f32[4,1], index: 5, kind: input, shape index: {}]   ;;  %s1848_s6 = inlined_call_operand.hbm [shape: f32[4,512], index: 6, kind: output, shape index: {}]  }
   0x1   :  { %13 = vsyncpa [#allocation3 + $0x1], 0  ;;  %s1523_s21 = smov 0   ;;  %s1525_s22 = smov 0  }
   0x2   :  { %s1527_s23 = smov 0   ;;  %s1529_s24 = smov 0  }
   0x3 LB: > { %s1544_s25 = sadd.s32 4294967295, %s1481_s24   ;;  %s1125_s26 = sadd.s32 4294967294, %s1481_s24   ;;  %s1481_s24 = sphi %s1529_s24, %s1854_s24   ;;  %s1477_s23 = sphi %s1527_s23, %s1853_s23   ;;  %s1473_s22 = sphi %s1525_s22, %s1852_s22   ;;  %s1469_s21 = sphi %s1523_s21, %s1851_s21  }
   0x4   : > { %s1548_s27 = sadd.s32 1, %s1481_s24   ;;  %s157_s28 = sadd.s32 1, %s1477_s23 }
   0x5   : > { %s154_s29 = ssub.s32 %s1481_s24, %s1548_s27  ;;  %p167_p0 = scmp.ne.s32.totalorder %s1477_s23, %s1473_s22 }
   0x6   : > { %p155_p1 = scmp.eq.s32.totalorder %s154_s29, 0  ;;  %p168_p2 = scmp.eq.s32.totalorder %s1544_s25, 1 }
   0x7   : > { %p173_p3 = scmp.ne.s32.totalorder %s1473_s22, %s1469_s21  ;;  %p174_p4 = scmp.eq.s32.totalorder %s1125_s26, 1 }
   0x8   : > { %s1559_s30 = scalar_select %p155_p1, %s1477_s23, %s157_s28  }
   0x9   : > { %p1561_p5 = por %p168_p2, %p167_p0  ;;  %p1565_p6 = por %p174_p4, %p173_p3 }
   0xa   : > { %p1128_p7 = scmp.ge.s32.totalorder %s1481_s24, 1  ;;  %p216_p8 = scmp.lt.s32.totalorder %s1481_s24, 3 }
   0xc   : > { %p217_p9 = pnand %p1128_p7, %p216_p8 }
   0xd   : > { %s1130_s9 = sshll.u32 (!%p217_p9), %s1544_s25, 1  ;;  %v1483_v0 = vmov (!%p217_p9), 0.0   ;;  %vm1484_vm0 = vmmov (!%p217_p9), 0   ;;  %v1583_v1 = vld [vmem:[%s1843_s1] sm:$0xff] (!%p217_p9)  ;;  %vm294_vm1 = vcmask (!%p217_p9), 64512   ;;  %v1593_v3 = vld [vmem:[%s1843_s1 + $0x8] sm:$0xff] (!%p217_p9) }
   0xe   : > { %220 = sbr.rel (%p217_p9) target bundleno = 1101 (0x44d), region = 44  ;;  %1200 = vmatprep.subr.mxu0 (!%p217_p9), %v1483_v0  ;;  %p247_p10 = scmp.lt.s32.totalorder (!%p217_p9), %s1130_s9, 3  ;;  %1202 = vmatprep.mubr.msk.f32.mxu0 (!%p217_p9), %vm1484_vm0, %v1483_v0  ;;  %v1602_v4 = vld [vmem:[%s1843_s1 + $0x10] sm:$0xff] (!%p217_p9)  ;;  %v1611_v5 = vld [vmem:[%s1843_s1 + $0x18] sm:$0xff] (!%p217_p9)  ;;  %v1620_v6 = vld [vmem:[%s1844_s2] sm:$0xff] (!%p217_p9)  ;;  %vm436_vm2 = vcmask (!%p217_p9), 261120  }
   0xf   : > { %1225 = vmatprep.mubr.msk.f32.mxu1 (!%p217_p9), %vm436_vm2, %v1620_v6  ;;  %v262_v7 = vld [vmem:[%s1845_s3] sm:$0xff] (!%p217_p9)  ;;  %v264_v8 = vld [vmem:[%s1845_s3 + $0x10] sm:$0xff] (!%p217_p9)  ;;  %v1485_v9 = vmov (!%p217_p9), 0   ;;  %v263_v10 = vld [vmem:[%s1845_s3 + $0x8] sm:$0xff] (!%p217_p9)  ;;  %s243_s15 = sand.u32 (!%p217_p9), 1, %s1473_s22   ;;  %s1161_s18 = sshll.u32 (!%p217_p9), %s1544_s25, 7 }
  0x10   : > { %1361 = vset.pattern.permute.xlu0 (!%p217_p9), %v1485_v9  ;;  %1362 = vset.pattern.permute.xlu1 (!%p217_p9), %v1485_v9  ;;  %v265_v11 = vld [vmem:[%s1845_s3 + $0x18] sm:$0xff] (!%p217_p9)  ;;  %v287_v12 = vld [vmem:[%s1847_s5] sm:$0xf] (!%p217_p9)  ;;  %v1642_v59 = vld [vmem:[%s1844_s2 + $0x8] sm:$0xff] (!%p217_p9)  ;;  %s1129_s16 = sshll.u32 (!%p217_p9), %s243_s15, 3  ;;  %s1797_s28 = scalar_lea.hbm (!%p217_p9), %s1848_s6, %s1161_s18 }
  0x11   : > { %268 = vperm.xlu0 (!%p217_p9), %1361, %v262_v7   ;;  %278 = vperm.xlu1 (!%p217_p9), %1362, %v264_v8   ;;  %v1648_v61 = vld [vmem:[%s1844_s2 + $0x10] sm:$0xff] (!%p217_p9)  ;;  %v1658_v62 = vld [vmem:[%s1844_s2 + $0x18] sm:$0xff] (!%p217_p9)  ;;  %v257_v63 = vld [vmem:[%s1843_s1 + $0x20] sm:$0xf] (!%p217_p9)  ;;  %s1785_s17 = scalar_lea.vmem (!%p217_p9), [#allocation2], %s1129_s16  ;;  %s1052_s29 = scalar_lea.sflag (!%p217_p9), [#allocation3], %s243_s15 }
  0x12   : > { %s1066_s19 = sshll.u32 (!%p217_p9), %s1785_s17, 4  ;;  %s1487_s25 = smov (!%p217_p9), [#allocation2]   ;;  %s1799_s19 = int_to_ptr.vmem [resolvable:$true] %s1066_s19 }
  0x15   : > { %s1856_s9 = smov (!%p247_p10, %s1130_s9), 3  ;;  %273 = vperm.xlu0 %1361, %v263_v10   ;;  %283 = vperm.xlu1 %1362, %v265_v11  }
  0x16   : > { %s1131_s10 = sshll.u32 %s1856_s9, 3  ;;  %s1419_s9 = scalar_lea.vmem %s1799_s19, 128 }
  0x17   : > { %s1578_s13 = scalar_lea.vmem %s1842_s0, %s1131_s10  ;;  %p1420_p11 = scmp.ne.s32.totalorder %s1799_s19, %s1419_s9 }
  0x18   : > { %v293_v2 = vld [vmem:[%s1578_s13] sm:$0xff]  ;;  %v1143_v60 = vld [vmem:[%s1578_s13 + $0x8] sm:$0xff]  ;;  %s1423_s10 = sshll.u32 %s1487_s25, 4  ;;  %s1424_s10 = int_to_ptr.vmem [resolvable:$false] %s1423_s10 }
  0x19   : > { %1201 = vmatpush3.msra.mxu0 %v293_v2  ;;  %290 = vperm.xlu0 %1361, %v287_v12   ;;  %p1421_p12 = pnand %p1420_p11, %p1561_p5  ;;  %s1425_s13 = scalar_lea.vmem %s1424_s10, 256 }
  0x1a   : > { %1203 = vmatmul.mubr.msk.f32.vlgmr.msra.gmra.mrb[0].mxu0 %vm294_vm1, %v1583_v1  ;;  %p1426_p0 = scmp.lt.s32.totalorder %s1799_s19, %s1424_s10  ;;  %p1427_p1 = scmp.lt.s32.totalorder %s1425_s13, %s1419_s9 }
  0x1b   : > { %1205 = vmatprep.mubr.msk.f32.mxu0 %vm1484_vm0, %v1483_v0  ;;  %p1422_p13 = pneg %p1421_p12 }
  0x1c   : > { %p1428_p2 = por %p1427_p1, %p1426_p0 }
  0x1e   : > { %1206 = vmatmul.mubr.msk.f32.gmra.mrb[2].mxu0 %vm294_vm1, %v1593_v3  ;;  %p1429_p3 = pnand %p1428_p2, %p1422_p13 }
  0x1f   : > { %1208 = vmatprep.mubr.msk.f32.mxu0 %vm1484_vm0, %v1483_v0 }
  0x22   : > { %1209 = vmatmul.mubr.msk.f32.gmra.mrb[4].mxu0 %vm294_vm1, %v1602_v4 }
  0x23   : > { %1211 = vmatprep.mubr.msk.f32.mxu0 %vm1484_vm0, %v1483_v0 }
  0x26   : > { %1212 = vmatmul.mubr.msk.f32.gmra.mrb[6].mxu0 %vm294_vm1, %v1611_v5 }
  0x27   : > { %1214 = vmatprep.mubr.msk.f32.mxu0 %vm1484_vm0, %v1483_v0 }
  0x2a   : > { %1215 = vmatmul.mubr.msk.f32.gmra.mrb[8].mxu0 %vm294_vm1, %v257_v63 }
  0x2b   : > { %1239 = vmatprep.mubr.msk.f32.mxu0 %vm1484_vm0, %v1483_v0 }
  0x90   : > { %v1691_v2 = vpop.permute.xlu0 %268 }
  0xed   : > { %v376_v13 = vpop.f32.mrb[0].mxu0 }
  0xee   : > { %v400_v14 = vmul.f32 %v376_v13, %v376_v13  ;;  %v1204_v15 = vpop.f32.mrb[1].mxu0 }
  0xf0   : > { %v404_v16 = vmul.f32 %v400_v14, %v376_v13 }
  0xf1   : > { %v381_v17 = vpop.f32.mrb[2].mxu0 }
  0xf2   : > { %v408_v18 = vmul.f32 0.044715, %v404_v16  ;;  %v401_v19 = vmul.f32 %v381_v17, %v381_v17  ;;  %v1207_v20 = vpop.f32.mrb[3].mxu0 }
  0xf4   : > { %v412_v21 = vadd.f32 %v408_v18, %v376_v13  ;;  %v405_v22 = vmul.f32 %v401_v19, %v381_v17 }
  0xf5   : > { %v386_v23 = vpop.f32.mrb[4].mxu0 }
  0xf6   : > { %v416_v24 = vmul.f32 0.7978846, %v412_v21  ;;  %v409_v25 = vmul.f32 0.044715, %v405_v22  ;;  %v402_v26 = vmul.f32 %v386_v23, %v386_v23  ;;  %v1210_v27 = vpop.f32.mrb[5].mxu0 }
  0xf8   : > { %1363 = vtanh.f32 %v416_v24  ;;  %v413_v28 = vadd.f32 %v409_v25, %v381_v17  ;;  %v406_v29 = vmul.f32 %v402_v26, %v386_v23 }
  0xf9   : > { %v391_v30 = vpop.f32.mrb[6].mxu0 }
  0xfa   : > { %v417_v31 = vmul.f32 0.7978846, %v413_v28  ;;  %v410_v32 = vmul.f32 0.044715, %v406_v29  ;;  %v403_v33 = vmul.f32 %v391_v30, %v391_v30  ;;  %v1213_v34 = vpop.f32.mrb[7].mxu0 }
  0xfc   : > { %1365 = vtanh.f32 %v417_v31  ;;  %v414_v35 = vadd.f32 %v410_v32, %v386_v23  ;;  %v407_v36 = vmul.f32 %v403_v33, %v391_v30 }
  0xfe   : > { %v418_v37 = vmul.f32 0.7978846, %v414_v35  ;;  %v411_v38 = vmul.f32 0.044715, %v407_v36 }
 0x100   : > { %1367 = vtanh.f32 %v418_v37  ;;  %v415_v39 = vadd.f32 %v411_v38, %v391_v30 }
 0x102   : > { %v1364_v40 = vpop.eup %1363  ;;  %v419_v41 = vmul.f32 0.7978846, %v415_v39 }
 0x103   : > { %v424_v42 = vadd.f32 1.0, %v1364_v40 }
 0x104   : > { %1369 = vtanh.f32 %v419_v41 }
 0x105   : > { %v428_v45 = vmul.f32 0.5, %v424_v42 }
 0x106   : > { %v1366_v43 = vpop.eup %1365 }
 0x107   : > { %v425_v44 = vadd.f32 1.0, %v1366_v43  ;;  %v432_v49 = vmul.f32 %v428_v45, %v376_v13 }
 0x109   : > { %v429_v46 = vmul.f32 0.5, %v425_v44 }
 0x10a   : > { %v1368_v47 = vpop.eup %1367 }
 0x10b   : > { %v426_v48 = vadd.f32 1.0, %v1368_v47  ;;  %v433_v50 = vmul.f32 %v429_v46, %v381_v17 }
 0x10d   : > { %v1284_v51 = vpack.c.bf16 %v433_v50, %v432_v49  ;;  %v430_v53 = vmul.f32 0.5, %v426_v48 }
 0x10e   : > { %v1370_v52 = vpop.eup %1369 }
 0x10f   : > { %v427_v54 = vadd.f32 1.0, %v1370_v52  ;;  %1285 = vmatprep.subr.bf16.mxu1 %v1284_v51  ;;  %v434_v56 = vmul.f32 %v430_v53, %v386_v23 }
 0x110   : > { %1287 = vmatpush3.bf16.msra.mxu1 %v1284_v51 }
 0x111   : > { %v431_v55 = vmul.f32 0.5, %v427_v54 }
 0x113   : > { %v435_v57 = vmul.f32 %v431_v55, %v391_v30 }
 0x115   : > { %v1288_v58 = vpack.c.bf16 %v435_v57, %v434_v56 }
 0x117   : > { %1289 = vmatprep.subr.bf16.mxu1 %v1288_v58 }
 0x118   : > { %1291 = vmatpush3.bf16.msra.mxu1 %v1288_v58 }
 0x119   : > { %1242 = vmatprep.subr.mxu1 %v1483_v0 }
 0x11b   : > { %1226 = vmatmul.mubr.msk.f32.vlgmr.msra.gmra.mrb[0].mxu1 %vm436_vm2, %v1642_v59 }
 0x11c   : > { %1228 = vmatprep.mubr.msk.f32.mxu1 %vm436_vm2, %v1648_v61  ;;  %1243 = vmatpush3.msra.mxu1 %v1143_v60 }
 0x11f   : > { %1229 = vmatmul.mubr.msk.f32.gmra.mrb[2].mxu1 %vm436_vm2, %v1658_v62 }
 0x120   : > { %1244 = vmatprep.mubr.msk.f32.mxu1 %vm1484_vm0, %v1483_v0 }
 0x123   : > { %1245 = vmatmul.mubr.msk.f32.vlgmr.msra.gmra.mrb[4].mxu1 %vm294_vm1, %v1583_v1  ;;  %v1486_v1 = vmov 0.0|0.0  }
 0x124   : > { %1247 = vmatprep.mubr.msk.f32.mxu1 %vm1484_vm0, %v1483_v0  ;;  %1292 = vmatprep.subr.bf16.mxu0 %v1486_v1 }
 0x125   : > { %1306 = vmatprep.subr.bf16.mxu1 %v1486_v1 }
 0x127   : > { %1248 = vmatmul.mubr.msk.f32.gmra.mrb[6].mxu1 %vm294_vm1, %v1593_v3  ;;  %v1693_v3 = vpop.permute.xlu1 %278 }
 0x128   : > { %1250 = vmatprep.mubr.msk.f32.mxu1 %vm1484_vm0, %v1483_v0 }
 0x12b   : > { %1251 = vmatmul.mubr.msk.f32.gmra.mrb[8].mxu1 %vm294_vm1, %v1602_v4  ;;  %v1695_v4 = vpop.permute.xlu0 %273  ;;  %v1705_v11 = vpop.permute.xlu1 %283 }
 0x12c   : > { %1253 = vmatprep.mubr.msk.f32.mxu1 %vm1484_vm0, %v1483_v0 }
 0x12f   : > { %1254 = vmatmul.mubr.msk.f32.gmra.mrb[10].mxu1 %vm294_vm1, %v1611_v5 }
 0x130   : > { %1256 = vmatprep.mubr.msk.f32.mxu1 %vm1484_vm0, %v1483_v0 }
 0x133   : > { %1257 = vmatmul.mubr.msk.f32.gmra.mrb[12].mxu1 %vm294_vm1, %v257_v63 }
 0x134   : > { %1281 = vmatprep.mubr.msk.f32.mxu1 %vm1484_vm0, %v1483_v0 }
 0x1ee   : > { %v1227_v5 = vpop.f32.mrb[0].mxu1 }
 0x1ef   : > { %v1698_v7 = vadd.f32 %v1227_v5, %v1695_v4  ;;  %v515_v8 = vpop.f32.mrb[1].mxu1 }
 0x1f0   : > { %v1701_v9 = vadd.f32 %v515_v8, %v1691_v2 }
 0x1f1   : > { %v535_v10 = vmul.f32 %v1698_v7, %v1698_v7 }
 0x1f2   : > { %v534_v0 = vmul.f32 %v1701_v9, %v1701_v9  ;;  %v1230_v12 = vpop.f32.mrb[2].mxu1 }
 0x1f3   : > { %v539_v13 = vmul.f32 %v535_v10, %v1698_v7  ;;  %v1711_v14 = vadd.f32 %v1230_v12, %v1705_v11  ;;  %v525_v15 = vpop.f32.mrb[3].mxu1 }
 0x1f4   : > { %v538_v16 = vmul.f32 %v534_v0, %v1701_v9  ;;  %v1715_v17 = vadd.f32 %v525_v15, %v1693_v3 }
 0x1f5   : > { %v543_v18 = vmul.f32 0.044715, %v539_v13  ;;  %v537_v19 = vmul.f32 %v1711_v14, %v1711_v14 }
 0x1f6   : > { %v542_v20 = vmul.f32 0.044715, %v538_v16  ;;  %v536_v21 = vmul.f32 %v1715_v17, %v1715_v17  ;;  %v1721_v22 = vpop.f32.mrb[4].mxu1 }
 0x1f7   : > { %v547_v23 = vadd.f32 %v543_v18, %v1698_v7  ;;  %v541_v24 = vmul.f32 %v537_v19, %v1711_v14  ;;  %v779_v25 = vmul.f32 %v1721_v22, %v1721_v22  ;;  %v1246_v26 = vpop.f32.mrb[5].mxu1 }
 0x1f8   : > { %v546_v27 = vadd.f32 %v542_v20, %v1701_v9  ;;  %v540_v28 = vmul.f32 %v536_v21, %v1715_v17 }
 0x1f9   : > { %v551_v29 = vmul.f32 0.7978846, %v547_v23  ;;  %v545_v30 = vmul.f32 0.044715, %v541_v24  ;;  %v783_v31 = vmul.f32 %v779_v25, %v1721_v22 }
 0x1fa   : > { %v550_v32 = vmul.f32 0.7978846, %v546_v27  ;;  %v544_v33 = vmul.f32 0.044715, %v540_v28  ;;  %v1730_v34 = vpop.f32.mrb[6].mxu1 }
 0x1fb   : > { %1371 = vtanh.f32 %v551_v29  ;;  %v549_v35 = vadd.f32 %v545_v30, %v1711_v14  ;;  %v787_v36 = vmul.f32 0.044715, %v783_v31  ;;  %v780_v37 = vmul.f32 %v1730_v34, %v1730_v34  ;;  %v1249_v38 = vpop.f32.mrb[7].mxu1 }
 0x1fc   : > { %1373 = vtanh.f32 %v550_v32  ;;  %v548_v39 = vadd.f32 %v544_v33, %v1715_v17 }
 0x1fd   : > { %v553_v40 = vmul.f32 0.7978846, %v549_v35  ;;  %v791_v41 = vadd.f32 %v787_v36, %v1721_v22  ;;  %v784_v42 = vmul.f32 %v780_v37, %v1730_v34 }
 0x1fe   : > { %v552_v43 = vmul.f32 0.7978846, %v548_v39  ;;  %v1738_v44 = vpop.f32.mrb[8].mxu1 }
 0x1ff   : > { %1375 = vtanh.f32 %v553_v40  ;;  %v795_v45 = vmul.f32 0.7978846, %v791_v41  ;;  %v788_v46 = vmul.f32 0.044715, %v784_v42  ;;  %v781_v47 = vmul.f32 %v1738_v44, %v1738_v44  ;;  %v1252_v48 = vpop.f32.mrb[9].mxu1 }
 0x200   : > { %1377 = vtanh.f32 %v552_v43 }
 0x201   : > { %1379 = vtanh.f32 %v795_v45  ;;  %v792_v49 = vadd.f32 %v788_v46, %v1730_v34  ;;  %v785_v50 = vmul.f32 %v781_v47, %v1738_v44 }
 0x202   : > { %v1744_v51 = vpop.f32.mrb[10].mxu1 }
 0x203   : > { %v796_v52 = vmul.f32 0.7978846, %v792_v49  ;;  %v789_v53 = vmul.f32 0.044715, %v785_v50  ;;  %v782_v54 = vmul.f32 %v1744_v51, %v1744_v51  ;;  %v1255_v55 = vpop.f32.mrb[11].mxu1 }
 0x205   : > { %v1372_v56 = vpop.eup %1371  ;;  %1381 = vtanh.f32 %v796_v52  ;;  %v793_v57 = vadd.f32 %v789_v53, %v1738_v44  ;;  %v786_v58 = vmul.f32 %v782_v54, %v1744_v51 }
 0x206   : > { %v1374_v60 = vpop.eup %1373  ;;  %v559_v63 = vadd.f32 1.0, %v1372_v56 }
 0x207   : > { %v558_v5 = vadd.f32 1.0, %v1374_v60  ;;  %v797_v8 = vmul.f32 0.7978846, %v793_v57  ;;  %v790_v10 = vmul.f32 0.044715, %v786_v58 }
 0x208   : > { %v563_v0 = vmul.f32 0.5, %v559_v63 }
 0x209   : > { %v1376_v12 = vpop.eup %1375  ;;  %v562_v13 = vmul.f32 0.5, %v558_v5  ;;  %1383 = vtanh.f32 %v797_v8  ;;  %v794_v15 = vadd.f32 %v790_v10, %v1744_v51 }
 0x20a   : > { %v1378_v16 = vpop.eup %1377  ;;  %v567_v18 = vmul.f32 %v563_v0, %v1698_v7  ;;  %v561_v19 = vadd.f32 1.0, %v1376_v12 }
 0x20b   : > { %v1380_v20 = vpop.eup %1379  ;;  %v566_v21 = vmul.f32 %v562_v13, %v1701_v9  ;;  %v560_v23 = vadd.f32 1.0, %v1378_v16  ;;  %v798_v24 = vmul.f32 0.7978846, %v794_v15 }
 0x20c   : > { %v571_v25 = vmul.f32 %v567_v18, %v567_v18  ;;  %v565_v26 = vmul.f32 0.5, %v561_v19  ;;  %v803_v27 = vadd.f32 1.0, %v1380_v20 }
 0x20d   : > { %v570_v28 = vmul.f32 %v566_v21, %v566_v21  ;;  %v564_v29 = vmul.f32 0.5, %v560_v23  ;;  %1385 = vtanh.f32 %v798_v24 }
 0x20e   : > { %v575_v30 = vmul.f32 %v571_v25, %v567_v18  ;;  %v569_v31 = vmul.f32 %v565_v26, %v1711_v14  ;;  %v807_v7 = vmul.f32 0.5, %v803_v27 }
 0x20f   : > { %v1382_v32 = vpop.eup %1381  ;;  %v574_v33 = vmul.f32 %v570_v28, %v566_v21  ;;  %v568_v35 = vmul.f32 %v564_v29, %v1715_v17 }
 0x210   : > { %v579_v36 = vmul.f32 0.044715, %v575_v30  ;;  %v573_v37 = vmul.f32 %v569_v31, %v569_v31  ;;  %v804_v38 = vadd.f32 1.0, %v1382_v32  ;;  %v811_v46 = vmul.f32 %v807_v7, %v1721_v22  ;;  %v1763_v32 = vld [vmem:[%s1846_s4] sm:$0xf] }
 0x211   : > { %v578_v9 = vmul.f32 0.044715, %v574_v33  ;;  %v572_v39 = vmul.f32 %v568_v35, %v568_v35 }
 0x212   : > { %v577_v40 = vmul.f32 %v573_v37, %v569_v31  ;;  %v808_v41 = vmul.f32 0.5, %v804_v38  ;;  %v583_v42 = vadd.f32 %v579_v36, %v567_v18 }
 0x213   : > { %v1384_v43 = vpop.eup %1383  ;;  %v576_v45 = vmul.f32 %v572_v39, %v568_v35  ;;  %v582_v47 = vadd.f32 %v578_v9, %v566_v21 }
 0x214   : > { %v581_v48 = vmul.f32 0.044715, %v577_v40  ;;  %v812_v14 = vmul.f32 %v808_v41, %v1730_v34  ;;  %v805_v49 = vadd.f32 1.0, %v1384_v43  ;;  %v587_v50 = vmul.f32 0.7978846, %v583_v42 }
 0x215   : > { %v580_v17 = vmul.f32 0.044715, %v576_v45  ;;  %v586_v52 = vmul.f32 0.7978846, %v582_v47 }
 0x216   : > { %1387 = vtanh.f32 %v587_v50  ;;  %v585_v53 = vadd.f32 %v581_v48, %v569_v31  ;;  %v1298_v54 = vpack.c.bf16 %v812_v14, %v811_v46  ;;  %v809_v57 = vmul.f32 0.5, %v805_v49 }
 0x217   : > { %v1386_v55 = vpop.eup %1385  ;;  %1389 = vtanh.f32 %v586_v52  ;;  %v584_v56 = vadd.f32 %v580_v17, %v568_v35 }
 0x218   : > { %v806_v58 = vadd.f32 1.0, %v1386_v55  ;;  %v589_v60 = vmul.f32 0.7978846, %v585_v53  ;;  %v813_v22 = vmul.f32 %v809_v57, %v1738_v44 }
 0x219   : > { %v588_v63 = vmul.f32 0.7978846, %v584_v56 }
 0x21a   : > { %v810_v5 = vmul.f32 0.5, %v806_v58  ;;  %1391 = vtanh.f32 %v589_v60 }
 0x21b   : > { %1393 = vtanh.f32 %v588_v63 }
 0x21c   : > { %v814_v34 = vmul.f32 %v810_v5, %v1744_v51 }
 0x21e   : > { %v1302_v8 = vpack.c.bf16 %v814_v34, %v813_v22 }
 0x220   : > { %v1388_v10 = vpop.eup %1387 }
 0x221   : > { %v1390_v0 = vpop.eup %1389  ;;  %v595_v12 = vadd.f32 1.0, %v1388_v10 }
 0x222   : > { %v594_v13 = vadd.f32 1.0, %v1390_v0 }
 0x223   : > { %v599_v15 = vmul.f32 0.5, %v595_v12 }
 0x224   : > { %v1392_v16 = vpop.eup %1391  ;;  %v598_v19 = vmul.f32 0.5, %v594_v13 }
 0x225   : > { %v1394_v20 = vpop.eup %1393  ;;  %v603_v23 = vmul.f32 %v599_v15, %v567_v18  ;;  %v597_v24 = vadd.f32 1.0, %v1392_v16  ;;  %v1775_v18 = vpop.permute.xlu0 %290 }
 0x226   : > { %v602_v25 = vmul.f32 %v598_v19, %v566_v21  ;;  %v596_v26 = vadd.f32 1.0, %v1394_v20 }
 0x227   : > { %v601_v27 = vmul.f32 0.5, %v597_v24 }
 0x228   : > { %v1293_v28 = vpack.c.bf16 %v603_v23, %v602_v25  ;;  %v600_v29 = vmul.f32 0.5, %v596_v26 }
 0x229   : > { %v605_v30 = vmul.f32 %v601_v27, %v569_v31 }
 0x22a   : > { %1294 = vmatpush3.bf16.msra.mxu0 %v1293_v28  ;;  %v604_v44 = vmul.f32 %v600_v29, %v568_v35 }
 0x22b   : > { %1295 = vmatprep.subr.bf16.mxu0 %v1486_v1 }
 0x22c   : > { %v1296_v51 = vpack.c.bf16 %v605_v30, %v604_v44 }
 0x22e   : > { %1297 = vmatpush3.bf16.msra.mxu0 %v1296_v51 }
 0x22f   : > { %1299 = vmatprep.subr.bf16.mxu0 %v1298_v54 }
 0x231   : > { %1240 = vmatmul.mubr.msk.f32.vlgmr.msra.gmra.mrb[8].mxu0 %vm436_vm2, %v1763_v32 }
 0x232   : > { %1301 = vmatpush3.bf16.msra.mxu0 %v1298_v54  ;;  %1267 = vmatprep.mubr.msk.f32.mxu0 %vm436_vm2, %v1620_v6 }
 0x233   : > { %1303 = vmatprep.subr.bf16.mxu0 %v1302_v8 }
 0x236   : > { %1305 = vmatpush3.bf16.msra.mxu0 %v1302_v8 }
 0x239   : > { %1268 = vmatmul.mubr.msk.f32.vlgmr.msra.gmra.mrb[10].mxu0 %vm436_vm2, %v1642_v59 }
 0x23a   : > { %1270 = vmatprep.mubr.msk.f32.mxu0 %vm436_vm2, %v1648_v61 }
 0x23d   : > { %1271 = vmatmul.mubr.msk.f32.gmra.mrb[12].mxu0 %vm436_vm2, %v1658_v62 }
 0x304   : > { %v675_v21 = vpop.f32.mrb[8].mxu0 }
 0x305   : > { %v676_v31 = vadd.f32 %v675_v21, %v1775_v18  ;;  %v1241_v33 = vpop.f32.mrb[9].mxu0 }
 0x307   : > { %v1142_v35 = vmul.f32 -1.442695, %v676_v31 }
 0x309   : > { %1395 = vpow2.f32 %v1142_v35 }
 0x30c   : > { %v1269_v6 = vpop.f32.mrb[10].mxu0 }
 0x30d   : > { %v887_v7 = vadd.f32 %v1269_v6, %v1695_v4  ;;  %v881_v36 = vpop.f32.mrb[11].mxu0 }
 0x30e   : > { %v882_v59 = vadd.f32 %v881_v36, %v1691_v2 }
 0x30f   : > { %v901_v37 = vmul.f32 %v887_v7, %v887_v7 }
 0x310   : > { %v900_v38 = vmul.f32 %v882_v59, %v882_v59  ;;  %v1272_v61 = vpop.f32.mrb[12].mxu0 }
 0x311   : > { %v905_v9 = vmul.f32 %v901_v37, %v887_v7  ;;  %v897_v62 = vadd.f32 %v1272_v61, %v1705_v11  ;;  %v891_v39 = vpop.f32.mrb[13].mxu0 }
 0x312   : > { %v904_v40 = vmul.f32 %v900_v38, %v882_v59  ;;  %v892_v41 = vadd.f32 %v891_v39, %v1693_v3 }
 0x313   : > { %v1396_v42 = vpop.eup %1395  ;;  %v909_v43 = vmul.f32 0.044715, %v905_v9  ;;  %v903_v45 = vmul.f32 %v897_v62, %v897_v62 }
 0x314   : > { %v683_v46 = vadd.f32 1.0, %v1396_v42  ;;  %v908_v47 = vmul.f32 0.044715, %v904_v40  ;;  %v902_v4 = vmul.f32 %v892_v41, %v892_v41 }
 0x315   : > { %v913_v48 = vadd.f32 %v909_v43, %v887_v7  ;;  %v907_v2 = vmul.f32 %v903_v45, %v897_v62 }
 0x316   : > { %1397 = vrcp.f32 %v683_v46  ;;  %v912_v14 = vadd.f32 %v908_v47, %v882_v59  ;;  %v906_v49 = vmul.f32 %v902_v4, %v892_v41 }
 0x317   : > { %v917_v50 = vmul.f32 0.7978846, %v913_v48  ;;  %v911_v17 = vmul.f32 0.044715, %v907_v2 }
 0x318   : > { %v916_v11 = vmul.f32 0.7978846, %v912_v14  ;;  %v910_v52 = vmul.f32 0.044715, %v906_v49 }
 0x319   : > { %1399 = vtanh.f32 %v917_v50  ;;  %v915_v3 = vadd.f32 %v911_v17, %v897_v62 }
 0x31a   : > { %1401 = vtanh.f32 %v916_v11  ;;  %v914_v53 = vadd.f32 %v910_v52, %v892_v41 }
 0x31b   : > { %v919_v54 = vmul.f32 0.7978846, %v915_v3 }
 0x31c   : > { %v918_v55 = vmul.f32 0.7978846, %v914_v53 }
 0x31d   : > { %1403 = vtanh.f32 %v919_v54 }
 0x31e   : > { %1405 = vtanh.f32 %v918_v55 }
 0x320   : > { %v1398_v56 = vpop.eup %1397 }
 0x321   : > { %686 = vst [vmem:[%s1785_s17] sm:$0xf] %v1398_v56 }
 0x323   : > { %v1400_v57 = vpop.eup %1399 }
 0x324   : > { %v1402_v58 = vpop.eup %1401  ;;  %v925_v60 = vadd.f32 1.0, %v1400_v57 }
 0x325   : > { %v924_v63 = vadd.f32 1.0, %v1402_v58 }
 0x326   : > { %v929_v5 = vmul.f32 0.5, %v925_v60 }
 0x327   : > { %v1404_v22 = vpop.eup %1403  ;;  %v928_v34 = vmul.f32 0.5, %v924_v63 }
 0x328   : > { %v1406_v8 = vpop.eup %1405  ;;  %v933_v10 = vmul.f32 %v929_v5, %v887_v7  ;;  %v927_v0 = vadd.f32 1.0, %v1404_v22 }
 0x329   : > { %v932_v12 = vmul.f32 %v928_v34, %v882_v59  ;;  %v926_v13 = vadd.f32 1.0, %v1406_v8 }
 0x32a   : > { %v937_v15 = vmul.f32 %v933_v10, %v933_v10  ;;  %v931_v16 = vmul.f32 0.5, %v927_v0 }
 0x32b   : > { %v936_v19 = vmul.f32 %v932_v12, %v932_v12  ;;  %v930_v20 = vmul.f32 0.5, %v926_v13 }
 0x32c   : > { %v941_v23 = vmul.f32 %v937_v15, %v933_v10  ;;  %v935_v24 = vmul.f32 %v931_v16, %v897_v62 }
 0x32d   : > { %v940_v25 = vmul.f32 %v936_v19, %v932_v12  ;;  %v934_v26 = vmul.f32 %v930_v20, %v892_v41 }
 0x32e   : > { %v945_v27 = vmul.f32 0.044715, %v941_v23  ;;  %v939_v28 = vmul.f32 %v935_v24, %v935_v24 }
 0x32f   : > { %v944_v29 = vmul.f32 0.044715, %v940_v25  ;;  %v938_v30 = vmul.f32 %v934_v26, %v934_v26 }
 0x330   : > { %v943_v44 = vmul.f32 %v939_v28, %v935_v24  ;;  %v949_v51 = vadd.f32 %v945_v27, %v933_v10 }
 0x331   : > { %v942_v21 = vmul.f32 %v938_v30, %v934_v26  ;;  %v948_v31 = vadd.f32 %v944_v29, %v932_v12 }
 0x332   : > { %v947_v33 = vmul.f32 0.044715, %v943_v44  ;;  %v953_v35 = vmul.f32 0.7978846, %v949_v51 }
 0x333   : > { %v946_v6 = vmul.f32 0.044715, %v942_v21  ;;  %v952_v7 = vmul.f32 0.7978846, %v948_v31 }
 0x334   : > { %1407 = vtanh.f32 %v953_v35  ;;  %v951_v36 = vadd.f32 %v947_v33, %v935_v24 }
 0x335   : > { %1409 = vtanh.f32 %v952_v7  ;;  %v950_v59 = vadd.f32 %v946_v6, %v934_v26 }
 0x336   : > { %v955_v37 = vmul.f32 0.7978846, %v951_v36 }
 0x337   : > { %v954_v38 = vmul.f32 0.7978846, %v950_v59 }
 0x338   : > { %1411 = vtanh.f32 %v955_v37 }
 0x339   : > { %1413 = vtanh.f32 %v954_v38 }
 0x33e   : > { %v1408_v61 = vpop.eup %1407 }
 0x33f   : > { %v1410_v9 = vpop.eup %1409  ;;  %v961_v62 = vadd.f32 1.0, %v1408_v61 }
 0x340   : > { %v960_v39 = vadd.f32 1.0, %v1410_v9 }
 0x341   : > { %v965_v40 = vmul.f32 0.5, %v961_v62 }
 0x342   : > { %v1412_v41 = vpop.eup %1411  ;;  %v964_v42 = vmul.f32 0.5, %v960_v39 }
 0x343   : > { %v1414_v43 = vpop.eup %1413  ;;  %v969_v45 = vmul.f32 %v965_v40, %v933_v10  ;;  %v963_v46 = vadd.f32 1.0, %v1412_v41 }
 0x344   : > { %v968_v47 = vmul.f32 %v964_v42, %v932_v12  ;;  %v962_v4 = vadd.f32 1.0, %v1414_v43 }
 0x345   : > { %v967_v48 = vmul.f32 0.5, %v963_v46 }
 0x346   : > { %v1307_v2 = vpack.c.bf16 %v969_v45, %v968_v47  ;;  %v966_v14 = vmul.f32 0.5, %v962_v4 }
 0x347   : > { %v971_v49 = vmul.f32 %v967_v48, %v935_v24 }
 0x348   : > { %1308 = vmatpush3.bf16.msra.mxu1 %v1307_v2  ;;  %v970_v50 = vmul.f32 %v966_v14, %v934_v26 }
 0x349   : > { %1309 = vmatprep.subr.bf16.mxu1 %v1486_v1 }
 0x34a   : > { %v1310_v17 = vpack.c.bf16 %v971_v49, %v970_v50 }
 0x34c   : > { %1311 = vmatpush3.bf16.msra.mxu1 %v1310_v17 }
 0x34f   : > { %1282 = vmatmul.mubr.msk.f32.vlgmr.msra.gmra.mrb[12].mxu1 %vm436_vm2, %v1763_v32 }
 0x422   : > { %v1038_v11 = vpop.f32.mrb[12].mxu1 }
 0x423   : > { %v1039_v52 = vadd.f32 %v1038_v11, %v1775_v18  ;;  %v1283_v3 = vpop.f32.mrb[13].mxu1 }
 0x425   : > { %v1154_v53 = vmul.f32 -1.442695, %v1039_v52 }
 0x427   : > { %1415 = vpow2.f32 %v1154_v53 }
 0x431   : > { %v1416_v54 = vpop.eup %1415 }
 0x432   : > { %v1046_v55 = vadd.f32 1.0, %v1416_v54 }
 0x434   : > { %1417 = vrcp.f32 %v1046_v55 }
 0x43e   : > { %v1418_v1 = vpop.eup %1417 }
 0x43f   : > { %1155 = vst [vmem:[%s1785_s17 + $0x4] sm:$0xf] %v1418_v1 }
 0x440   : > { %1432 = shalt.err (!%p1429_p3)
}
 0x441   : > { %s1433_s11 = scalar_lea.hbm %s1797_s28, 128  ;;  %s1437_s15 = scalar_lea.hbm %s1848_s6, 256 }
 0x442   : > { %p1434_p4 = scmp.ne.s32.totalorder %s1797_s28, %s1433_s11  ;;  %p1438_p9 = scmp.lt.u32.totalorder %s1797_s28, %s1848_s6 }
 0x443   : > { %p1439_p10 = scmp.lt.u32.totalorder %s1437_s15, %s1433_s11  ;;  %p1441_p12 = scmp.lt.u32.totalorder %s1433_s11, %s1797_s28 }
 0x444   : > { %p1435_p7 = pnand %p1434_p4, %p1561_p5 }
 0x445   : > { %p1440_p11 = por %p1439_p10, %p1438_p9 }
 0x446   : > { %p1436_p8 = pneg %p1435_p7 }
 0x447   : > { %p1442_p13 = por %p1441_p12, %p1440_p11 }
 0x449   : > { %p1443_p0 = pnand %p1442_p13, %p1436_p8 }
 0x44b   : > { %1446 = shalt.err (!%p1443_p0)
}
 0x44c   : > { %1318 = dma.vmem_to_hbm [thread:$0]  (%p1561_p5), %s1799_s19, 128, %s1797_s28, %s1052_s29  }
 0x44d PF: > { %p1324_p1 = scmp.ge.s32.totalorder %s1481_s24, 2  ;;  %s1078_s18 = sand.u32 1, %s1469_s21  }
 0x44e   : > { %s1079_s20 = scalar_lea.sflag [#allocation3], %s1078_s18 }
 0x44f   : > { %p1321_p2 = pnand %p1324_p1, %p1565_p6 }
 0x451   : > { %1464 = dma.done.wait (!%p1321_p2), %s1079_s20, 128  }
 0x452   : > { %1466 = vsyncadd (!%p1321_p2), %s1079_s20, 4294967168  ;;  %p16_p3 = scmp.ge.s32.totalorder %s1548_s27, 4   ;;  %s1851_s21 = smov %s1473_s22 }
 0x453   : > { %s1852_s22 = smov %s1477_s23  ;;  %s1853_s23 = smov %s1559_s30 }
 0x454   : > { %s1854_s24 = smov %s1548_s27  ;;  %18 = sbr.rel (!%p16_p3) target bundleno = 3 (0x3), region = 81 }
 0x45b   :  { %1084 = vsyncpa [#allocation3], 1 }
 0x45c   :  { %1086 = vsyncpa [#allocation3 + $0x1], 1 }

</bundles_post_ra>
